<compile_context>
chip_gen: v5e
topology: v5e:2x2
jax: 0.10.0
libtpu: 0.0.40
codegen_flags: <defaults>
</compile_context>

<pallas_src>
import functools

import jax
import jax.numpy as jnp
from jax.experimental import pallas as pl
from jax.experimental.pallas import tpu as pltpu


def _round_up(x, m):
    return ((x + m - 1) // m) * m


def _budgets():
    """(per-block tile budget in f32 bytes, scoped VMEM limit), per generation."""
    vmem_cap = None
    try:
        vmem_cap = int(pltpu.get_tpu_info().vmem_capacity_bytes)
    except Exception:
        vmem_cap = None
    if vmem_cap is not None and vmem_cap >= 100 * 1024 * 1024:
        # v5e / v6e: 128 MiB VMEM -> bigger blocks, fewer grid steps.
        return 8 * 1024 * 1024, 96 * 1024 * 1024
    # v7x (64 MiB per TensorCore) or unknown: stay conservative.
    return 4 * 1024 * 1024, 48 * 1024 * 1024


# --------------------------- channels_last ---------------------------------
# x viewed as (T, C); normalize each row over the last (channel) axis.

def _ln_rows_kernel(x_ref, w_ref, b_ref, o_ref, *, eps):
    x = x_ref[...].astype(jnp.float32)                      # (tr, C) f32 compute
    w = w_ref[...].astype(jnp.float32)                      # (1, C) resident
    b = b_ref[...].astype(jnp.float32)
    mu = jnp.mean(x, axis=-1, keepdims=True)
    xc = x - mu
    var = jnp.mean(xc * xc, axis=-1, keepdims=True)
    inv = jax.lax.rsqrt(var + eps)                          # EUP rsqrt, no divide
    o_ref[...] = ((xc * inv) * w + b).astype(o_ref.dtype)   # write native dtype


def layer_norm_channels_last(x, weight, bias, eps=1e-6):
    orig_shape = x.shape
    c = orig_shape[-1]
    t = 1
    for d in orig_shape[:-1]:
        t *= d
    block_bytes, vmem_limit = _budgets()

    x2 = x.reshape(t, c)                                    # free view, native dtype

    # Row tile (multiple of 8) sized to fill the per-block f32 budget; no hard
    # row cap.  Ragged tails are handled by Pallas OOB masking (no pad/slice).
    max_rows = max(8, (block_bytes // (4 * c)) // 8 * 8)
    tr = min(max_rows, _round_up(t, 8))
    grid = (pl.cdiv(t, tr),)

    w2 = weight.reshape(1, c)
    b2 = bias.reshape(1, c)

    out = pl.pallas_call(
        functools.partial(_ln_rows_kernel, eps=eps),
        grid=grid,
        in_specs=[
            pl.BlockSpec((tr, c), lambda i: (i, 0)),
            pl.BlockSpec((1, c), lambda i: (0, 0)),          # weight resident
            pl.BlockSpec((1, c), lambda i: (0, 0)),          # bias resident
        ],
        out_specs=pl.BlockSpec((tr, c), lambda i: (i, 0)),
        out_shape=jax.ShapeDtypeStruct((t, c), x.dtype),
        compiler_params=pltpu.CompilerParams(
            dimension_semantics=("parallel",),
            vmem_limit_bytes=vmem_limit,
        ),
    )(x2, w2, b2)
    return out.reshape(orig_shape)


# --------------------------- channels_first --------------------------------
# x viewed as (B, C, S); normalize over the channel axis (axis=1) for every
# (batch, spatial) position.  The large spatial axis stays on the lane dim.

def _ln_chan_kernel(x_ref, w_ref, b_ref, o_ref, *, eps):
    x = x_ref[...].astype(jnp.float32)                      # (1, C, ts)
    w = w_ref[...].astype(jnp.float32)                      # (1, C, 1)
    b = b_ref[...].astype(jnp.float32)
    mu = jnp.mean(x, axis=1, keepdims=True)
    xc = x - mu
    var = jnp.mean(xc * xc, axis=1, keepdims=True)
    inv = jax.lax.rsqrt(var + eps)
    o_ref[...] = ((xc * inv) * w + b).astype(o_ref.dtype)


def layer_norm_channels_first(x, weight, bias, eps=1e-6):
    b, c = x.shape[0], x.shape[1]
    s = 1
    for d in x.shape[2:]:
        s *= d
    block_bytes, vmem_limit = _budgets()

    x3 = x.reshape(b, c, s)                                 # free view, native dtype

    # Lane tile (multiple of 128) sized to fill the per-block f32 budget; no
    # 512-lane cap.  Ragged tails handled by Pallas OOB masking.
    max_lanes = max(128, (block_bytes // (4 * c)) // 128 * 128)
    ts = min(max_lanes, _round_up(s, 128))
    grid = (b, pl.cdiv(s, ts))

    w3 = weight.reshape(1, c, 1)
    b3 = bias.reshape(1, c, 1)

    out = pl.pallas_call(
        functools.partial(_ln_chan_kernel, eps=eps),
        grid=grid,
        in_specs=[
            pl.BlockSpec((1, c, ts), lambda i, j: (i, 0, j)),
            pl.BlockSpec((1, c, 1), lambda i, j: (0, 0, 0)),
            pl.BlockSpec((1, c, 1), lambda i, j: (0, 0, 0)),
        ],
        out_specs=pl.BlockSpec((1, c, ts), lambda i, j: (i, 0, j)),
        out_shape=jax.ShapeDtypeStruct((b, c, s), x.dtype),
        compiler_params=pltpu.CompilerParams(
            dimension_semantics=("parallel", "parallel"),
            vmem_limit_bytes=vmem_limit,
        ),
    )(x3, w3, b3)
    return out.reshape(x.shape)


# ------------------------------ module API ----------------------------------

def layer_norm(x, weight, bias, eps=1e-6, data_format="channels_last"):
    """Equivalent of the PyTorch LayerNorm module's forward."""
    if data_format == "channels_last":
        return layer_norm_channels_last(x, weight, bias, eps)
    elif data_format == "channels_first":
        return layer_norm_channels_first(x, weight, bias, eps)
    raise NotImplementedError(data_format)


if __name__ == "__main__":
    key = jax.random.PRNGKey(0)
    kx, kw, kb = jax.random.split(key, 3)

    B, C, H, W = 2, 4, 16, 16
    eps = 1e-6
    x_cf = jax.random.normal(kx, (B, C, H, W), jnp.float32)         # NCHW
    weight = 1.0 + 0.5 * jax.random.normal(kw, (C,), jnp.float32)
    bias = 0.1 * jax.random.normal(kb, (C,), jnp.float32)

    # channels_first path (NCHW input, normalize over dim 1)
    fwd_cf = jax.jit(lambda a: layer_norm(a, weight, bias, eps, "channels_first"))
    y_cf = fwd_cf(x_cf)
    jax.block_until_ready(y_cf)

    # channels_last path (NHWC input, normalize over last dim)
    x_cl = jnp.transpose(x_cf, (0, 2, 3, 1))
    fwd_cl = jax.jit(lambda a: layer_norm(a, weight, bias, eps, "channels_last"))
    y_cl = fwd_cl(x_cl)
    jax.block_until_ready(y_cl)

    # pure-JAX references (exactly the PyTorch math)
    def ref_cl(a, w, b):
        mu = jnp.mean(a, axis=-1, keepdims=True)
        var = jnp.mean((a - mu) ** 2, axis=-1, keepdims=True)
        return (a - mu) / jnp.sqrt(var + eps) * w + b

    def ref_cf(a, w, b):
        mu = jnp.mean(a, axis=1, keepdims=True)
        var = jnp.mean((a - mu) ** 2, axis=1, keepdims=True)
        xn = (a - mu) / jnp.sqrt(var + eps)
        return w[None, :, None, None] * xn + b[None, :, None, None]

    assert y_cf.shape == x_cf.shape and y_cf.dtype == x_cf.dtype
    assert y_cl.shape == x_cl.shape and y_cl.dtype == x_cl.dtype
    assert bool(jnp.all(jnp.isfinite(y_cf))) and bool(jnp.all(jnp.isfinite(y_cl)))
    assert jnp.allclose(y_cl, ref_cl(x_cl, weight, bias), atol=1e-4, rtol=1e-4)
    assert jnp.allclose(y_cf, ref_cf(x_cf, weight, bias), atol=1e-4, rtol=1e-4)
    # both data formats agree on the same underlying tensor
    assert jnp.allclose(jnp.transpose(y_cl, (0, 3, 1, 2)), y_cf, atol=1e-4, rtol=1e-4)

    # Ragged shapes (row / lane counts that do not hit 8 / 128 multiples)
    # exercise the pad-free OOB-masked boundary blocks.
    x_rag_cl = jax.random.normal(kx, (3, 5, 7, C), jnp.float32)
    y_rag_cl = layer_norm(x_rag_cl, weight, bias, eps, "channels_last")
    jax.block_until_ready(y_rag_cl)
    assert jnp.allclose(y_rag_cl, ref_cl(x_rag_cl, weight, bias), atol=1e-4, rtol=1e-4)

    x_rag_cf = jax.random.normal(kx, (2, C, 10, 13), jnp.float32)
    y_rag_cf = layer_norm(x_rag_cf, weight, bias, eps, "channels_first")
    jax.block_until_ready(y_rag_cf)
    assert jnp.allclose(y_rag_cf, ref_cf(x_rag_cf, weight, bias), atol=1e-4, rtol=1e-4)

    # bf16 stays bf16 on the HBM wire (f32 compute inside the kernel only).
    x_bf = x_cl.astype(jnp.bfloat16)
    y_bf = layer_norm(x_bf, weight, bias, eps, "channels_last")
    jax.block_until_ready(y_bf)
    assert y_bf.dtype == jnp.bfloat16
    assert jnp.allclose(
        y_bf.astype(jnp.float32),
        ref_cl(x_bf.astype(jnp.float32), weight, bias),
        atol=1e-1, rtol=5e-2,
    )

    print("KERNEL_OK")
</pallas_src>

<mosaic_0001>
module attributes {stable_mosaic.version = 11 : i64} {
  func.func @_ln_chan_kernel(%arg0: i32, %arg1: i32, %arg2: memref<1x4x256xf32, #tpu.memory_space<vmem>>, %arg3: memref<1x4x1xf32, #tpu.memory_space<vmem>>, %arg4: memref<1x4x1xf32, #tpu.memory_space<vmem>>, %arg5: memref<1x4x256xf32, #tpu.memory_space<vmem>>) attributes {dimension_semantics = [#tpu.dimension_semantics<parallel>, #tpu.dimension_semantics<parallel>], iteration_bounds = array<i64: 2, 1>, scalar_prefetch = 0 : i64, scratch_operands = 0 : i64, tpu.core_type = #tpu.core_type<tc>, window_params = [{transform_indices = @transform_0, window_bounds = array<i64: 1, 4, 256>}, {pipeline_mode = #tpu.pipeline_mode<synchronous>, transform_indices = @transform_1, window_bounds = array<i64: 1, 4, 1>}, {pipeline_mode = #tpu.pipeline_mode<synchronous>, transform_indices = @transform_2, window_bounds = array<i64: 1, 4, 1>}, {transform_indices = @transform_3, window_bounds = array<i64: 1, 4, 256>}]} {
    %c0 = arith.constant 0 : index
    %c0_0 = arith.constant 0 : index
    %c0_1 = arith.constant 0 : index
    %0 = vector.load %arg2[%c0, %c0_0, %c0_1] : memref<1x4x256xf32, #tpu.memory_space<vmem>>, vector<1x4x256xf32>
    %c0_2 = arith.constant 0 : index
    %c0_3 = arith.constant 0 : index
    %c0_4 = arith.constant 0 : index
    %1 = vector.load %arg3[%c0_2, %c0_3, %c0_4] : memref<1x4x1xf32, #tpu.memory_space<vmem>>, vector<1x4x1xf32>
    %c0_5 = arith.constant 0 : index
    %c0_6 = arith.constant 0 : index
    %c0_7 = arith.constant 0 : index
    %2 = vector.load %arg4[%c0_5, %c0_6, %c0_7] : memref<1x4x1xf32, #tpu.memory_space<vmem>>, vector<1x4x1xf32>
    %cst = arith.constant dense<0.000000e+00> : vector<1x256xf32>
    %3 = vector.multi_reduction <add>, %0, %cst [1] : vector<1x4x256xf32> to vector<1x256xf32>
    %4 = vector.shape_cast %3 : vector<1x256xf32> to vector<1x1x256xf32>
    %cst_8 = arith.constant 4.000000e+00 : f32
    %5 = vector.broadcast %cst_8 : f32 to vector<1x1x256xf32>
    %6 = arith.divf %4, %5 : vector<1x1x256xf32>
    %7 = vector.broadcast %6 : vector<1x1x256xf32> to vector<1x4x256xf32>
    %8 = arith.subf %0, %7 : vector<1x4x256xf32>
    %9 = arith.mulf %8, %8 : vector<1x4x256xf32>
    %cst_9 = arith.constant dense<0.000000e+00> : vector<1x256xf32>
    %10 = vector.multi_reduction <add>, %9, %cst_9 [1] : vector<1x4x256xf32> to vector<1x256xf32>
    %11 = vector.shape_cast %10 : vector<1x256xf32> to vector<1x1x256xf32>
    %cst_10 = arith.constant 4.000000e+00 : f32
    %12 = vector.broadcast %cst_10 : f32 to vector<1x1x256xf32>
    %13 = arith.divf %11, %12 : vector<1x1x256xf32>
    %cst_11 = arith.constant 9.99999997E-7 : f32
    %14 = vector.broadcast %cst_11 : f32 to vector<1x1x256xf32>
    %15 = arith.addf %13, %14 : vector<1x1x256xf32>
    %16 = math.rsqrt %15 : vector<1x1x256xf32>
    %17 = vector.broadcast %16 : vector<1x1x256xf32> to vector<1x4x256xf32>
    %18 = arith.mulf %8, %17 : vector<1x4x256xf32>
    %19 = vector.broadcast %1 : vector<1x4x1xf32> to vector<1x4x256xf32>
    %20 = arith.mulf %18, %19 : vector<1x4x256xf32>
    %21 = vector.broadcast %2 : vector<1x4x1xf32> to vector<1x4x256xf32>
    %22 = arith.addf %20, %21 : vector<1x4x256xf32>
    %c0_12 = arith.constant 0 : index
    %c0_13 = arith.constant 0 : index
    %c0_14 = arith.constant 0 : index
    %23 = vector.load %arg5[%c0_12, %c0_13, %c0_14] : memref<1x4x256xf32, #tpu.memory_space<vmem>>, vector<1x4x256xf32>
    tpu.vector_store %arg5[%c0_12, %c0_13, %c0_14], %22 {strides = array<i32>} : memref<1x4x256xf32, #tpu.memory_space<vmem>>, vector<1x4x256xf32>,
    return
  }
  func.func @transform_0(%arg0: i32, %arg1: i32) -> (i32, i32, i32) {
    %c0_i32 = arith.constant 0 : i32
    %c0_i32_0 = arith.constant 0 : i32
    return %arg0, %c0_i32, %arg1 : i32, i32, i32
  }
  func.func @transform_1(%arg0: i32, %arg1: i32) -> (i32, i32, i32) {
    %c0_i32 = arith.constant 0 : i32
    %c0_i32_0 = arith.constant 0 : i32
    %c0_i32_1 = arith.constant 0 : i32
    %c0_i32_2 = arith.constant 0 : i32
    return %c0_i32, %c0_i32_0, %c0_i32_1 : i32, i32, i32
  }
  func.func @transform_2(%arg0: i32, %arg1: i32) -> (i32, i32, i32) {
    %c0_i32 = arith.constant 0 : i32
    %c0_i32_0 = arith.constant 0 : i32
    %c0_i32_1 = arith.constant 0 : i32
    %c0_i32_2 = arith.constant 0 : i32
    return %c0_i32, %c0_i32_0, %c0_i32_1 : i32, i32, i32
  }
  func.func @transform_3(%arg0: i32, %arg1: i32) -> (i32, i32, i32) {
    %c0_i32 = arith.constant 0 : i32
    %c0_i32_0 = arith.constant 0 : i32
    return %arg0, %c0_i32, %arg1 : i32, i32, i32
  }
}

</mosaic_0001>

<bundles_post_ra>
// kernel: _lambda_.1
= control target key start
LH: loop header
LB: loop body
LE: loop exit
PB: predicated region body
PF: predicated region fallthrough
CT: control target
= control target key end

     0   :  { %s502_s12 = smov 0   ;;  %s504_s13 = smov 0   ;;  %s554_s0 = inlined_call_operand.vmem [shape: f32[2,4,256], index: 0, kind: input, shape index: {}]   ;;  %s555_s1 = inlined_call_operand.vmem [shape: f32[1,4,1], index: 1, kind: input, shape index: {}]   ;;  %s556_s2 = inlined_call_operand.vmem [shape: f32[1,4,1], index: 2, kind: input, shape index: {}]   ;;  %s557_s3 = inlined_call_operand.vmem [shape: f32[2,4,256], index: 3, kind: output, shape index: {}]  }
   0x1   :  { %s506_s14 = smov 0  }
   0x2 LB: > { %s25_s15 = sadd.s32 1, %s473_s13  ;;  %p412_p0 = scmp.ge.s32.totalorder %s477_s14, 1  ;;  %s477_s14 = sphi %s506_s14, %s13_s14   ;;  %s473_s13 = sphi %s504_s13, %s559_s13   ;;  %s469_s12 = sphi %s502_s12, %s558_s12  }
   0x3   : > { %p27_p1 = scmp.ge.s32.totalorder %s25_s15, 2  ;;  %p158_p2 = scmp.lt.s32.totalorder %s477_s14, 3 }
   0x5   : > { %s561_s15 = smov (%p27_p1, %s25_s15), 0  ;;  %p159_p3 = pnand %p412_p0, %p158_p2 }
   0x6   : > { %p191_p4 = scmp.lt.s32.totalorder (!%p159_p3), %s469_s12, 1 }
   0x7   : > { %162 = sbr.rel (%p159_p3) target bundleno = 142 (0x8e), region = 32 }
   0xc   : > { %v211_v0 = vld [vmem:[%s555_s1] sm:$0xf]  ;;  %v479_v1 = vmov 0   ;;  %v480_v2 = vmov 4.0   ;;  %s563_s12 = smov (!%p191_p4, %s469_s12), 1  ;;  %vm219_vm0 = vcmask 1043456  }
   0xd   : > { %448 = vset.pattern.permute.xlu0 %v479_v1  ;;  %449 = vrcp.f32 %v480_v2  ;;  %s419_s18 = sshll.u32 %s563_s12, 3  ;;  %v212_v3 = vld [vmem:[%s556_s2] sm:$0xf] }
   0xe   : > { %302 = vperm.xlu0 %448, %v211_v0   ;;  %s198_s21 = scalar_lea.vmem %s554_s0, %s419_s18  ;;  %s208_s26 = scalar_lea.vmem %s557_s3, %s419_s18 }
   0xf   : > { %v210_v5 = vld [vmem:[%s198_s21] sm:$0xff] }
  0x10   : > { %214 = vst [vmem:[#allocation1] ss:$2 sm:$0xff] %v210_v5 }
  0x13   : > { %v450_v4 = vpop.eup %449 }
  0x14   : > { %v235_v6 = vmul.f32 4.0, %v450_v4  ;;  %vm239_vm1 = vweird.f32 %v450_v4 }
  0x16   : > { %312 = vperm.xlu0 %448, %v212_v3   ;;  %v236_v7 = vsub.f32 1.0, %v235_v6  ;;  %v481_v6 = vmov 839922192  }
  0x17   : > { %v216_v8 = vld.sshfl [vmem:[#allocation1 + $0x8] sm:$0xff pattern:$0x75316420]  ;;  %v215_v10 = vld.sshfl [vmem:[#allocation1] sm:$0xff pattern:$0x75316420] }
  0x18   : > { %v227_v9 = vsel %vm219_vm0, %v216_v8, 0.0  ;;  %v237_v12 = vmul.f32 %v450_v4, %v236_v7  ;;  %v220_v13 = vsel %vm219_vm0, %v215_v10, 0.0  ;;  %v305_v7 = vunpack.c.l.s4 %v481_v6 }
  0x19   : > { %v228_v11 = vrot.slane %v227_v9, 4  ;;  %v221_v14 = vrot.slane %v220_v13, 4 }
  0x1a   : > { %v238_v18 = vadd.f32 %v450_v4, %v237_v12 }
  0x1b   : > { %v229_v15 = vadd.f32 %v228_v11, %v227_v9  ;;  %v222_v16 = vadd.f32 %v221_v14, %v220_v13  ;;  %v306_v9 = vunpack.c.0.s8 %v305_v7 }
  0x1c   : > { %v240_v23 = vsel %vm239_vm1, %v450_v4, %v238_v18 }
  0x1d   : > { %v230_v17 = vrot.slane %v229_v15, 2  ;;  %v223_v19 = vrot.slane %v222_v16, 2 }
  0x1f   : > { %v231_v20 = vadd.f32 %v230_v17, %v229_v15  ;;  %v224_v21 = vadd.f32 %v223_v19, %v222_v16 }
  0x21   : > { %v232_v22 = vrot.slane %v231_v20, 1  ;;  %v225_v24 = vrot.slane %v224_v21, 1 }
  0x23   : > { %v233_v25 = vadd.f32 %v232_v22, %v231_v20  ;;  %v226_v26 = vadd.f32 %v225_v24, %v224_v21 }
  0x25   : > { %v242_v27 = vmul.f32 %v240_v23, %v233_v25  ;;  %v241_v28 = vmul.f32 %v240_v23, %v226_v26 }
  0x27   : > { %v245_v29 = vrot.slane %v242_v27, 4 }
  0x29   : > { %v246_v30 = vsel %vm219_vm0, %v241_v28, %v245_v29 }
  0x2a   : > { %v248_v31 = vsub.f32 %v210_v5, %v246_v30 }
  0x2c   : > { %v249_v32 = vmul.f32 %v248_v31, %v248_v31 }
  0x2e   : > { %251 = vst [vmem:[#allocation1] ss:$2 sm:$0xff] %v249_v32 }
  0x35   : > { %v253_v33 = vld.sshfl [vmem:[#allocation1 + $0x8] sm:$0xff pattern:$0x75316420]  ;;  %v252_v35 = vld.sshfl [vmem:[#allocation1] sm:$0xff pattern:$0x75316420] }
  0x36   : > { %v263_v34 = vsel %vm219_vm0, %v253_v33, 0.0  ;;  %v256_v37 = vsel %vm219_vm0, %v252_v35, 0.0 }
  0x37   : > { %v264_v36 = vrot.slane %v263_v34, 4  ;;  %v257_v38 = vrot.slane %v256_v37, 4 }
  0x39   : > { %v265_v39 = vadd.f32 %v264_v36, %v263_v34  ;;  %v258_v40 = vadd.f32 %v257_v38, %v256_v37 }
  0x3b   : > { %v266_v41 = vrot.slane %v265_v39, 2  ;;  %v259_v42 = vrot.slane %v258_v40, 2 }
  0x3d   : > { %v267_v43 = vadd.f32 %v266_v41, %v265_v39  ;;  %v260_v44 = vadd.f32 %v259_v42, %v258_v40 }
  0x3f   : > { %v268_v45 = vrot.slane %v267_v43, 1  ;;  %v261_v46 = vrot.slane %v260_v44, 1 }
  0x41   : > { %v269_v47 = vadd.f32 %v268_v45, %v267_v43  ;;  %v262_v48 = vadd.f32 %v261_v46, %v260_v44 }
  0x43   : > { %v271_v49 = vmul.f32 %v269_v47, %v240_v23  ;;  %v270_v50 = vmul.f32 %v262_v48, %v240_v23 }
  0x45   : > { %v273_v51 = vadd.f32 1e-06, %v271_v49  ;;  %v272_v52 = vadd.f32 1e-06, %v270_v50 }
  0x47   : > { %451 = vrsqrt.f32 %v273_v51  ;;  %vm290_vm2 = vweird.f32 %v273_v51  ;;  %vm280_vm5 = vweird.f32 %v272_v52 }
  0x48   : > { %453 = vrsqrt.f32 %v272_v52 }
  0x4d   : > { %v452_v53 = vpop.eup %451 }
  0x4e   : > { %v285_v54 = vmul.f32 %v452_v53, %v273_v51  ;;  %v454_v55 = vpop.eup %453  ;;  %vm291_vm3 = vweird.f32 %v452_v53 }
  0x4f   : > { %v275_v56 = vmul.f32 %v454_v55, %v272_v52  ;;  %vm292_vm4 = vmor %vm290_vm2, %vm291_vm3  ;;  %vm281_vm6 = vweird.f32 %v454_v55 }
  0x50   : > { %v286_v57 = vmul.f32 %v452_v53, %v285_v54  ;;  %vm282_vm7 = vmor %vm280_vm5, %vm281_vm6 }
  0x51   : > { %v276_v58 = vmul.f32 %v454_v55, %v275_v56 }
  0x52   : > { %v287_v59 = vmul.f32 0.5, %v286_v57 }
  0x53   : > { %v277_v60 = vmul.f32 0.5, %v276_v58 }
  0x54   : > { %v288_v61 = vsub.f32 1.5, %v287_v59 }
  0x55   : > { %v278_v62 = vsub.f32 1.5, %v277_v60 }
  0x56   : > { %v289_v63 = vmul.f32 %v452_v53, %v288_v61 }
  0x57   : > { %v279_v0 = vmul.f32 %v454_v55, %v278_v62 }
  0x58   : > { %v293_v1 = vsel %vm292_vm4, %v452_v53, %v289_v63 }
  0x59   : > { %v296_v2 = vrot.slane %v293_v1, 4  ;;  %v283_v3 = vsel %vm282_vm7, %v454_v55, %v279_v0 }
  0x5b   : > { %v297_v4 = vsel %vm219_vm0, %v283_v3, %v296_v2 }
  0x5c   : > { %v299_v5 = vmul.f32 %v297_v4, %v248_v31 }
  0x80   : > { %v303_v8 = vpop.permute.xlu0 %302 }
  0x81   : > { %v307_v10 = vperm.slane %v303_v8, %v306_v9 }
  0x83   : > { %v309_v12 = vmul.f32 %v307_v10, %v299_v5 }
  0x88   : > { %v313_v11 = vpop.permute.xlu0 %312 }
  0x89   : > { %v317_v13 = vperm.slane %v313_v11, %v306_v9 }
  0x8b   : > { %v319_v14 = vadd.f32 %v317_v13, %v309_v12 }
  0x8d   : > { %320 = vst [vmem:[%s208_s26] sm:$0xff] %v319_v14 }
  0x8e PF: > { %s13_s14 = sadd.s32 1, %s477_s14   ;;  %s558_s12 = smov %s473_s13 }
  0x8f   : > { %p10_p5 = scmp.ge.s32.totalorder %s13_s14, 4   ;;  %s559_s13 = smov %s561_s15 }
  0x91   :  { %12 = sbr.rel (!%p10_p5) target bundleno = 2 (0x2), region = 62 }

</bundles_post_ra>
